<compile_context>
chip_gen: v7x
topology: tpu7x:2x2x1
jax: 0.10.0
libtpu: 0.0.40
codegen_flags: <defaults>
</compile_context>

<pallas_src>
import functools

import jax
import jax.numpy as jnp
from jax import lax
from jax.experimental import pallas as pl
from jax.experimental.pallas import tpu as pltpu


def _backbone_update_kernel(s_ref, w_ref, b_ref, o_ref):
    # s_ref: (tm, C_s) row tile, w_ref: (D_out, C_s), b_ref: (D_out, 1),
    # o_ref: (D_out, tm)  -- lane-dense output (tm along lanes).
    acc = lax.dot_general(
        w_ref[...],
        s_ref[...],
        dimension_numbers=(((1,), (1,)), ((), ())),  # contract c_s with c_s
        preferred_element_type=jnp.float32,
    )
    o_ref[...] = (acc + b_ref[...].astype(jnp.float32)).astype(o_ref.dtype)


def _sublane_multiple(dtype) -> int:
    # f32 -> 8, bf16 -> 16, int8/fp8 -> 32 (sub-32-bit dtypes pack sublanes).
    itemsize = jnp.dtype(dtype).itemsize
    return max(8, 32 // itemsize)


def _round_up(x: int, m: int) -> int:
    return ((x + m - 1) // m) * m


def _padded_tile_bytes(rows: int, cols: int, dtype) -> int:
    """VMEM bytes actually occupied by a (rows, cols) tile after (sublane, lane)
    padding: last dim rounds up to 128 lanes, second-to-last to the dtype's
    sublane packing multiple."""
    sub = _sublane_multiple(dtype)
    itemsize = jnp.dtype(dtype).itemsize
    return _round_up(max(rows, 1), sub) * _round_up(max(cols, 1), 128) * itemsize


@functools.lru_cache(maxsize=1)
def _vmem_capacity_bytes() -> int:
    """Physical per-core VMEM; conservative 64 MiB fallback (v7x-sized)."""
    try:
        return int(pltpu.get_tpu_info().vmem_capacity_bytes)
    except Exception:  # query unavailable (e.g. interpret mode) -> be conservative
        return 64 << 20


@functools.partial(jax.jit, static_argnames=("tm",))
def backbone_update(s, weight, bias, *, tm=None):
    """Pallas implementation of BackboneUpdate.forward.

    Args:
      s:      [*, N_res, C_s] single representation.
      weight: [D_out, C_s] (PyTorch nn.Linear layout, used as-is).
      bias:   [D_out].
      tm:     optional requested row tile (rounded to a multiple of 128 and
              clamped).  Default None = auto-pick the largest tile that fits
              the generation-aware VMEM budget.
    Returns:
      [*, N_res, D_out] update vector (D_out = 6 or 3).
    """
    *lead, c_s = s.shape
    d_out = weight.shape[0]

    s2d = s.reshape(-1, c_s)
    m = s2d.shape[0]
    itemsize = jnp.dtype(s.dtype).itemsize

    # --- generation-aware tile cap -----------------------------------------
    vmem_cap = _vmem_capacity_bytes()
    if vmem_cap >= (100 << 20):       # v5e / v6e: 128 MiB VMEM
        max_tile_bytes = 28 << 20
    else:                             # v7x-class: 64 MiB VMEM
        max_tile_bytes = 14 << 20

    # Padded row width (lanes round up to 128) so the cap reflects real VMEM use.
    row_bytes = _round_up(c_s, 128) * itemsize
    tm_cap = max(128, (max_tile_bytes // row_bytes) // 128 * 128)

    if tm is None:
        tm_eff = tm_cap                       # auto: fill the VMEM budget
    else:
        tm_eff = min(max(128, _round_up(tm, 128)), tm_cap)

    if m <= tm_eff:
        # Single block covering everything: block dims equal the full array
        # dims, so no (8, 128) divisibility constraints apply.
        tm_eff = m

    grid = (pl.cdiv(m, tm_eff),)              # no host-side pad / slice round trip

    # --- parameters in native layout ----------------------------------------
    if weight.dtype != s.dtype:
        weight = weight.astype(s.dtype)       # tiny (d_out, c_s) cast
    b2d = bias.reshape(d_out, 1)              # (D_out, 1), broadcast over lanes

    # --- VMEM budget with (sublane, lane) padding ----------------------------
    vmem_bytes = int(
        2 * _padded_tile_bytes(tm_eff, c_s, s.dtype)        # s tiles (dbl-buffered)
        + 2 * _padded_tile_bytes(d_out, tm_eff, s.dtype)    # out tiles
        + 2 * _padded_tile_bytes(d_out, c_s, weight.dtype)  # weight
        + 2 * _padded_tile_bytes(d_out, 1, b2d.dtype)       # bias
        + (4 << 20)                                         # Mosaic internals headroom
    )
    vmem_limit = min(max(vmem_bytes, 16 << 20), int(0.75 * vmem_cap))

    cost = pl.CostEstimate(
        flops=2 * m * c_s * d_out,
        transcendentals=0,
        bytes_accessed=(m * c_s + c_s * d_out + d_out + m * d_out) * itemsize,
    )

    out_t = pl.pallas_call(
        _backbone_update_kernel,
        out_shape=jax.ShapeDtypeStruct((d_out, m), s.dtype),   # lane-dense output
        grid_spec=pltpu.PrefetchScalarGridSpec(
            num_scalar_prefetch=0,
            grid=grid,
            in_specs=[
                pl.BlockSpec((tm_eff, c_s), lambda i: (i, 0)),   # s row tile
                pl.BlockSpec((d_out, c_s), lambda i: (0, 0)),    # full weight
                pl.BlockSpec((d_out, 1), lambda i: (0, 0)),      # bias
            ],
            out_specs=pl.BlockSpec((d_out, tm_eff), lambda i: (0, i)),
        ),
        compiler_params=pltpu.CompilerParams(
            dimension_semantics=("parallel",),
            vmem_limit_bytes=vmem_limit,
        ),
        cost_estimate=cost,
    )(s2d, weight, b2d)

    # Tiny (d_out, M) -> (M, d_out) transpose; negligible next to the s read.
    return out_t.T.reshape(*lead, d_out)
    # TODO(synk): highest-value follow-up is fusing this ~3 flop/byte linear
    # into the kernel that produces/consumes s (rigid/quaternion update) to
    # avoid the extra full HBM read of s.


if __name__ == "__main__":
    key = jax.random.PRNGKey(0)
    k_s, k_w, k_b, k_s2, k_s3 = jax.random.split(key, 5)

    # Small shapes consistent with the module: batch=2, N_res=8, c_s=32.
    batch, n_res, c_s = 2, 8, 32
    use_rot_updates = True
    update_dim = 6 if use_rot_updates else 3

    s = jax.random.normal(k_s, (batch, n_res, c_s), dtype=jnp.float32)

    # Module uses init='final' (weights=0, bias=0), which would make the output
    # trivially zero; use deterministic nonzero parameters so the matmul path
    # is actually exercised.  Set to zeros to match 'final' init exactly.
    weight = 0.02 * jax.random.normal(k_w, (update_dim, c_s), dtype=jnp.float32)
    bias = 0.01 * jax.random.normal(k_b, (update_dim,), dtype=jnp.float32)

    out = backbone_update(s, weight, bias)
    out = jax.block_until_ready(out)
    ref = jnp.einsum("bnc,dc->bnd", s, weight) + bias
    assert out.shape == (batch, n_res, update_dim)
    assert jnp.allclose(out, ref, atol=1e-5, rtol=1e-5)

    # Row count not a multiple of the sublane group: single full-array block.
    n_res2 = 13
    s2 = jax.random.normal(k_s2, (batch, n_res2, c_s), dtype=jnp.float32)
    out2 = backbone_update(s2, weight, bias)
    out2 = jax.block_until_ready(out2)
    ref2 = jnp.einsum("bnc,dc->bnd", s2, weight) + bias
    assert out2.shape == (batch, n_res2, update_dim)
    assert jnp.allclose(out2, ref2, atol=1e-5, rtol=1e-5)

    # Force a multi-step grid with a masked partial last block (tm=128, M=200):
    # exercises the pipelined path and lane-dense partial writeback.
    n_res3 = 100
    s3 = jax.random.normal(k_s3, (batch, n_res3, c_s), dtype=jnp.float32)
    out3 = backbone_update(s3, weight, bias, tm=128)
    out3 = jax.block_until_ready(out3)
    ref3 = jnp.einsum("bnc,dc->bnd", s3, weight) + bias
    assert out3.shape == (batch, n_res3, update_dim)
    assert jnp.allclose(out3, ref3, atol=1e-5, rtol=1e-5)

    print("KERNEL_OK")
</pallas_src>

<mosaic_0001>
module attributes {stable_mosaic.version = 11 : i64} {
  func.func @_backbone_update_kernel(%arg0: i32, %arg1: memref<16x32xf32, #tpu.memory_space<vmem>>, %arg2: memref<6x32xf32, #tpu.memory_space<vmem>>, %arg3: memref<6x1xf32, #tpu.memory_space<vmem>>, %arg4: memref<6x16xf32, #tpu.memory_space<vmem>>) attributes {dimension_semantics = [#tpu.dimension_semantics<parallel>], iteration_bounds = array<i64: 1>, scalar_prefetch = 0 : i64, scratch_operands = 0 : i64, tpu.core_type = #tpu.core_type<tc>, window_params = [{transform_indices = @transform_0, window_bounds = array<i64: 16, 32>}, {pipeline_mode = #tpu.pipeline_mode<synchronous>, transform_indices = @transform_1, window_bounds = array<i64: 6, 32>}, {pipeline_mode = #tpu.pipeline_mode<synchronous>, transform_indices = @transform_2, window_bounds = array<i64: 6, 1>}, {transform_indices = @transform_3, window_bounds = array<i64: 6, 16>}]} {
    %c0 = arith.constant 0 : index
    %c0_0 = arith.constant 0 : index
    %0 = vector.load %arg2[%c0, %c0_0] : memref<6x32xf32, #tpu.memory_space<vmem>>, vector<6x32xf32>
    %c0_1 = arith.constant 0 : index
    %c0_2 = arith.constant 0 : index
    %1 = vector.load %arg1[%c0_1, %c0_2] : memref<16x32xf32, #tpu.memory_space<vmem>>, vector<16x32xf32>
    %cst = arith.constant dense<0.000000e+00> : vector<6x16xf32>
    %2 = tpu.matmul %0, %1, %cst {dimension_numbers = #tpu.dot_dimension_numbers<[1], [1], [0], [0], [0, 0, 1, 0], [], []>} : vector<6x32xf32>, vector<16x32xf32>, vector<6x16xf32> -> vector<6x16xf32>
    %c0_3 = arith.constant 0 : index
    %c0_4 = arith.constant 0 : index
    %3 = vector.load %arg3[%c0_3, %c0_4] : memref<6x1xf32, #tpu.memory_space<vmem>>, vector<6x1xf32>
    %4 = vector.broadcast %3 : vector<6x1xf32> to vector<6x16xf32>
    %5 = arith.addf %2, %4 : vector<6x16xf32>
    %c0_5 = arith.constant 0 : index
    %c0_6 = arith.constant 0 : index
    %6 = vector.load %arg4[%c0_5, %c0_6] : memref<6x16xf32, #tpu.memory_space<vmem>>, vector<6x16xf32>
    tpu.vector_store %arg4[%c0_5, %c0_6], %5 {strides = array<i32>} : memref<6x16xf32, #tpu.memory_space<vmem>>, vector<6x16xf32>,
    return
  }
  func.func @transform_0(%arg0: i32) -> (i32, i32) {
    %c0_i32 = arith.constant 0 : i32
    %c0_i32_0 = arith.constant 0 : i32
    return %arg0, %c0_i32 : i32, i32
  }
  func.func @transform_1(%arg0: i32) -> (i32, i32) {
    %c0_i32 = arith.constant 0 : i32
    %c0_i32_0 = arith.constant 0 : i32
    %c0_i32_1 = arith.constant 0 : i32
    return %c0_i32, %c0_i32_0 : i32, i32
  }
  func.func @transform_2(%arg0: i32) -> (i32, i32) {
    %c0_i32 = arith.constant 0 : i32
    %c0_i32_0 = arith.constant 0 : i32
    %c0_i32_1 = arith.constant 0 : i32
    return %c0_i32, %c0_i32_0 : i32, i32
  }
  func.func @transform_3(%arg0: i32) -> (i32, i32) {
    %c0_i32 = arith.constant 0 : i32
    %c0_i32_0 = arith.constant 0 : i32
    return %c0_i32, %arg0 : i32, i32
  }
}

</mosaic_0001>

<bundles_post_ra>
// kernel: backbone_update.1
= control target key start
LH: loop header
LB: loop body
LE: loop exit
PB: predicated region body
PF: predicated region fallthrough
CT: control target
= control target key end

     0   :  { %8 = vsyncpa [#allocation3], 0  ;;  %s169_s12 = smov [#allocation2]   ;;  %s218_s0 = inlined_call_operand.vmem [shape: f32[16,32], index: 0, kind: input, shape index: {}]   ;;  %s219_s1 = inlined_call_operand.hbm [shape: f32[6,32], index: 1, kind: input, shape index: {}]   ;;  %s220_s2 = inlined_call_operand.vmem [shape: f32[6,1], index: 2, kind: input, shape index: {}]   ;;  %s221_s3 = inlined_call_operand.vmem [shape: f32[6,16], index: 3, kind: output, shape index: {}]  }
   0x1   :  { %s17_s13 = sshll.u32 %s169_s12, 4  ;;  %s145_s16 = scalar_lea.hbm %s219_s1, 128  ;;  %s18_s13 = int_to_ptr.vmem [resolvable:$true] %s17_s13 }
   0x2   :  { %p146_p0 = scmp.ne.s32.totalorder %s219_s1, %s145_s16  ;;  %p149_p1 = scmp.lt.u32.totalorder %s145_s16, %s219_s1 }
   0x4   :  { %p151_p2 = pnand %p149_p1, %p146_p0 }
   0x6   :  { %154 = shalt.err (!%p151_p2)
}
   0x7   :  { %s155_s21 = scalar_lea.vmem %s18_s13, 128  ;;  %p160_p4 = scmp.lt.s32.totalorder %s18_s13, %s18_s13 }
   0x8   :  { %p156_p3 = scmp.ne.s32.totalorder %s18_s13, %s155_s21  ;;  %p161_p5 = scmp.lt.s32.totalorder %s155_s21, %s155_s21 }
   0xa   :  { %p162_p6 = por %p161_p5, %p160_p4 }
   0xc   :  { %p163_p7 = pnand %p162_p6, %p156_p3 }
   0xe   :  { %166 = shalt.err (!%p163_p7)
}
   0xf   :  { %20 = dma.hbm_to_vmem [thread:$0]  %s219_s1, 128, %s18_s13, [#allocation3]  }
  0x10   :  { %167 = dma.done.wait [#allocation3], 128  }
  0x11   :  { %168 = vsyncadd [#allocation3], 4294967168  ;;  %v170_v0 = vmov 0.0|0.0   ;;  %vm171_vm0 = vmmov 0   ;;  %v172_v1 = vmov 0.0   ;;  %v173_v2 = vmov 0  }
  0x12   :  { %135 = vmatprep.subr.bf16.mxu0 %v170_v0  ;;  %132 = vmatprep.mubr.msk.f32.mxu0 %vm171_vm0, %v172_v1  ;;  %vm35_vm1 = vcmask 261120   ;;  %v27_v3 = vld [vmem:[%s218_s0] sm:$0xff]  ;;  %v28_v4 = vld [vmem:[%s218_s0 + $0x8] sm:$0xff]  ;;  %vm115_vm3 = vcmask 128000  }
  0x13   :  { %144 = vset.pattern.permute.xlu0 %v173_v2  ;;  %vm137_vm2 = vmpackc.low %vm35_vm1, %vm35_vm1  ;;  %v136_v5 = vpack.c.bf16 %v28_v4, %v27_v3  ;;  %v29_v6 = vld [vmem:[%s220_s2] sm:$0x3f] }
  0x14   :  { %32 = vperm.xlu0 %144, %v29_v6   ;;  %v26_v7 = vld [vmem:[#allocation2] sm:$0x3f] }
  0x15   :  { %138 = vmatpush3.bf16.xpose.msk.msra.mxu0 %vm137_vm2, %v136_v5 }
  0x1c   :  { %133 = vmatmul.mubr.msk.f32.vlgmr.msra.gmra.mrb[0].mxu0 %vm35_vm1, %v26_v7 }
  0x93   :  { %v33_v8 = vpop.permute.xlu0 %32 }
  0xef   :  { %v111_v9 = vpop.f32.mrb[0].mxu0 }
  0xf0   :  { %v112_v10 = vadd.f32 %v111_v9, %v33_v8  ;;  %v134_v11 = vpop.f32.mrb[1].mxu0 }
  0xf2   :  { %116 = vst.msk [vmem:[%s221_s3] sm:$0x3f] %vm115_vm3, %v112_v10 }
  0xf3   :  { %121 = vsyncpa [#allocation3], 1 }

</bundles_post_ra>
